<compile_context>
chip_gen: v7x
topology: tpu7x:2x2x1
jax: 0.10.0
libtpu: 0.0.40
codegen_flags: <defaults>
</compile_context>

<pallas_src>
import numpy as np
import jax
import jax.numpy as jnp
from jax.experimental import pallas as pl
from jax.experimental.pallas import tpu as pltpu


def _round_up(x, m):
    return (x + m - 1) // m * m


def _cparams(dim_sem, est_bytes):
    # Explicit scoped-VMEM limit: residents + double buffers (x2 margin),
    # floored at 32 MiB (>= default everywhere), capped at v7x physical 64 MiB.
    limit = int(min(64 << 20, max(32 << 20, 2 * int(est_bytes))))
    return pltpu.CompilerParams(dimension_semantics=dim_sem,
                                vmem_limit_bytes=limit)


def _pick_row_tile(n, bytes_per_row, cap=512, budget=8 << 20):
    """Row tile from a VMEM budget (multiple of 16 for bf16 outputs)."""
    tn = int(min(cap, budget // max(bytes_per_row, 1)))
    tn = max(16, tn - tn % 16)
    return int(min(tn, _round_up(n, 16)))


def _choose_time_block(T, Bp, Cp, budget=8 << 20):
    """Timesteps per recurrent grid step from a VMEM budget (+vreg guard)."""
    # double-buffered bf16 traffic per timestep: gx (2 dirs) + y (2 dirs)
    per_t = 2 * 2 * Bp * 4 * Cp * 2 + 2 * 2 * Bp * Cp * 2
    tt = budget // max(per_t, 1)
    if Bp * Cp >= 32 * 512:        # static-unroll vreg-pressure guard
        tt = min(tt, 8)
    tt = int(max(8, min(32, tt)))
    tt -= tt % 8
    tt = max(tt, 8)
    return min(tt, _round_up(max(int(T), 1), 8))


# ----------------------------------------------------------------------------
# Kernel 1: hoisted input projection for BOTH directions (bf16 MXU, fp32 acc)
#   gx_f = x @ Wih_f + b_f ;  gx_b = x @ Wih_b + b_b      (row-tiled, parallel)
# ----------------------------------------------------------------------------
def _gates_x_kernel(x_ref, wf_ref, wb_ref, bf_ref, bb_ref, of_ref, ob_ref):
    x = x_ref[...].astype(jnp.bfloat16)
    gf = jnp.dot(x, wf_ref[...], preferred_element_type=jnp.float32) + bf_ref[...]
    gb = jnp.dot(x, wb_ref[...], preferred_element_type=jnp.float32) + bb_ref[...]
    of_ref[...] = gf.astype(jnp.bfloat16)
    ob_ref[...] = gb.astype(jnp.bfloat16)


def gates_x(x, w_f, w_b, b_f, b_b):
    N, K = x.shape
    G = w_f.shape[1]
    # per row, double-buffered: f32 input row + two bf16 output rows
    bytes_per_row = 2 * K * 4 + 2 * 2 * G * 2
    TN = _pick_row_tile(N, bytes_per_row)
    est = 2 * (2 * K * G * 2) + 2 * (2 * G * 4) + TN * bytes_per_row
    return pl.pallas_call(
        _gates_x_kernel,
        out_shape=(jax.ShapeDtypeStruct((N, G), jnp.bfloat16),
                   jax.ShapeDtypeStruct((N, G), jnp.bfloat16)),
        grid=(pl.cdiv(N, TN),),
        in_specs=[pl.BlockSpec((TN, K), lambda r: (r, 0)),
                  pl.BlockSpec((K, G), lambda r: (0, 0)),
                  pl.BlockSpec((K, G), lambda r: (0, 0)),
                  pl.BlockSpec((1, G), lambda r: (0, 0)),
                  pl.BlockSpec((1, G), lambda r: (0, 0))],
        out_specs=(pl.BlockSpec((TN, G), lambda r: (r, 0)),
                   pl.BlockSpec((TN, G), lambda r: (r, 0))),
        compiler_params=_cparams(("parallel",), est),
    )(x, w_f, w_b, b_f, b_b)


# ----------------------------------------------------------------------------
# Kernel 2: fused bidirectional LSTM recurrence (bf16 MXU operands, fp32 state)
#   grid = (Tp // TT,); each step handles TT forward timesteps and the TT
#   matching backward timesteps (fed / written via reversed-block index_maps).
# ----------------------------------------------------------------------------
def _bilstm_kernel(gxf_ref, gxb_ref, lens_ref, whhf_ref, whhb_ref,
                   yf_ref, yb_ref, h_out_ref, c_out_ref,
                   hf_sc, cf_sc, hb_sc, cb_sc):
    i = pl.program_id(0)
    nt = pl.num_programs(0)
    TT = gxf_ref.shape[0]
    Cp = yf_ref.shape[-1]

    @pl.when(i == 0)
    def _():
        hf_sc[...] = jnp.zeros_like(hf_sc)
        cf_sc[...] = jnp.zeros_like(cf_sc)
        hb_sc[...] = jnp.zeros_like(hb_sc)
        cb_sc[...] = jnp.zeros_like(cb_sc)
        # constant-index output blocks: init so any intermediate writeback
        # never flushes uninitialized VMEM; real values land on the last step.
        h_out_ref[...] = jnp.zeros_like(h_out_ref)
        c_out_ref[...] = jnp.zeros_like(c_out_ref)

    lens = lens_ref[...]            # (Bp, 1) int32 (constant block: fetched once)
    whh_f = whhf_ref[...]           # (Cp, 4*Cp) bf16, resident
    whh_b = whhb_ref[...]

    h_f = hf_sc[...]                # fp32 state
    c_f = cf_sc[...]
    h_b = hb_sc[...]
    c_b = cb_sc[...]

    t0 = i * TT
    t_last = nt * TT - 1

    def sigmoid(x):                 # one EUP push instead of exp + reciprocal
        return 0.5 * jnp.tanh(0.5 * x) + 0.5

    def cell(gates, c_prev):
        ig = sigmoid(gates[:, 0:Cp])
        fg = sigmoid(gates[:, Cp:2 * Cp])
        gg = jnp.tanh(gates[:, 2 * Cp:3 * Cp])
        og = sigmoid(gates[:, 3 * Cp:4 * Cp])
        c_new = fg * c_prev + ig * gg
        h_new = og * jnp.tanh(c_new)
        return h_new, c_new

    # static unroll over the TT timesteps in this block
    for k in range(TT):
        t_fwd = t0 + k                  # global forward time index
        t_bwd = t_last - t_fwd          # global backward time index

        g_f = gxf_ref[k].astype(jnp.float32) + jnp.dot(
            h_f.astype(jnp.bfloat16), whh_f, preferred_element_type=jnp.float32)
        g_b = gxb_ref[TT - 1 - k].astype(jnp.float32) + jnp.dot(
            h_b.astype(jnp.bfloat16), whh_b, preferred_element_type=jnp.float32)

        hf_new, cf_new = cell(g_f, c_f)
        hb_new, cb_new = cell(g_b, c_b)

        v_f = lens > t_fwd              # (Bp, 1) bool
        v_b = lens > t_bwd

        yf_ref[k] = jnp.where(v_f, hf_new, 0.0).astype(jnp.bfloat16)
        yb_ref[TT - 1 - k] = jnp.where(v_b, hb_new, 0.0).astype(jnp.bfloat16)

        h_f = jnp.where(v_f, hf_new, h_f)        # freeze past length (fp32)
        c_f = jnp.where(v_f, cf_new, c_f)
        h_b = jnp.where(v_b, hb_new, h_b)
        c_b = jnp.where(v_b, cb_new, c_b)

    hf_sc[...] = h_f
    cf_sc[...] = c_f
    hb_sc[...] = h_b
    cb_sc[...] = c_b

    @pl.when(i == nt - 1)
    def _():
        h_out_ref[0] = h_f
        h_out_ref[1] = h_b
        c_out_ref[0] = c_f
        c_out_ref[1] = c_b


def bilstm(gx_f, gx_b, lens2d, whh_f, whh_b, *, time_block):
    Tp, Bp, G = gx_f.shape
    Cp = G // 4
    TT = time_block
    NT = Tp // TT
    est = (2 * (2 * Cp * G * 2)                 # resident Whh pair (margin)
           + 2 * 2 * TT * Bp * G * 2            # gx double buffers, both dirs
           + 2 * 2 * TT * Bp * Cp * 2           # y double buffers, both dirs
           + 2 * 2 * 2 * Bp * Cp * 4            # h/c outputs
           + 4 * Bp * Cp * 4)                   # fp32 scratch
    return pl.pallas_call(
        _bilstm_kernel,
        out_shape=(jax.ShapeDtypeStruct((Tp, Bp, Cp), jnp.bfloat16),
                   jax.ShapeDtypeStruct((Tp, Bp, Cp), jnp.bfloat16),
                   jax.ShapeDtypeStruct((2, Bp, Cp), jnp.float32),
                   jax.ShapeDtypeStruct((2, Bp, Cp), jnp.float32)),
        grid_spec=pltpu.PrefetchScalarGridSpec(
            num_scalar_prefetch=0,
            grid=(NT,),
            in_specs=[
                pl.BlockSpec((TT, Bp, G), lambda i: (i, 0, 0)),              # gx fwd
                pl.BlockSpec((TT, Bp, G), lambda i: (NT - 1 - i, 0, 0)),      # gx bwd
                pl.BlockSpec((Bp, 1), lambda i: (0, 0)),                      # lens
                pl.BlockSpec((Cp, G), lambda i: (0, 0)),                      # Whh fwd
                pl.BlockSpec((Cp, G), lambda i: (0, 0)),                      # Whh bwd
            ],
            out_specs=[
                pl.BlockSpec((TT, Bp, Cp), lambda i: (i, 0, 0)),              # y fwd
                pl.BlockSpec((TT, Bp, Cp), lambda i: (NT - 1 - i, 0, 0)),      # y bwd
                pl.BlockSpec((2, Bp, Cp), lambda i: (0, 0, 0)),               # h_n
                pl.BlockSpec((2, Bp, Cp), lambda i: (0, 0, 0)),               # c_n
            ],
            scratch_shapes=[pltpu.VMEM((Bp, Cp), jnp.float32)] * 4),
        compiler_params=_cparams(("arbitrary",), est),
    )(gx_f, gx_b, lens2d, whh_f, whh_b)


# ----------------------------------------------------------------------------
# Kernel 3: projection Linear + tanh, subsample stride folded into the
#   index_map (input window t*TB*sub; per-k strided reads inside the block).
# ----------------------------------------------------------------------------
def _make_proj_kernel(tb, sub):
    def kernel(yf_ref, yb_ref, wf_ref, wb_ref, b_ref, o_ref):
        wf = wf_ref[...]
        wb = wb_ref[...]
        b = b_ref[...]
        for k in range(tb):
            yf = yf_ref[k * sub]          # (Bp, Cp) bf16
            yb = yb_ref[k * sub]
            acc = (jnp.dot(yf, wf, preferred_element_type=jnp.float32)
                   + jnp.dot(yb, wb, preferred_element_type=jnp.float32) + b)
            o_ref[k] = jnp.tanh(acc)
    return kernel


def _choose_proj_tblock(Ts, Tp, sub, Bp, Cp, Hp, budget=8 << 20):
    per_tb = 2 * 2 * sub * Bp * Cp * 2 + 2 * Bp * Hp * 4
    cap = int(max(1, min(Ts, 16, budget // max(per_tb, 1))))
    for tb in range(cap, 1, -1):
        if -(-Ts // tb) * tb * sub <= Tp:    # full input window stays in-bounds
            return tb
    return 1


def proj_tanh(y_f, y_b, w_f, w_b, b, *, n_frames, sub):
    Tp, Bp, Cp = y_f.shape
    Hp = w_f.shape[1]
    TB = _choose_proj_tblock(n_frames, Tp, sub, Bp, Cp, Hp)
    n_tb = -(-n_frames // TB)
    est = (2 * (2 * Cp * Hp * 2) + 2 * Hp * 4
           + 2 * 2 * TB * sub * Bp * Cp * 2
           + 2 * TB * Bp * Hp * 4)
    return pl.pallas_call(
        _make_proj_kernel(TB, sub),
        out_shape=jax.ShapeDtypeStruct((n_tb * TB, Bp, Hp), jnp.float32),
        grid=(n_tb,),
        in_specs=[pl.BlockSpec((TB * sub, Bp, Cp), lambda t: (t, 0, 0)),
                  pl.BlockSpec((TB * sub, Bp, Cp), lambda t: (t, 0, 0)),
                  pl.BlockSpec((Cp, Hp), lambda t: (0, 0)),
                  pl.BlockSpec((Cp, Hp), lambda t: (0, 0)),
                  pl.BlockSpec((1, Hp), lambda t: (0, 0))],
        out_specs=pl.BlockSpec((TB, Bp, Hp), lambda t: (t, 0, 0)),
        compiler_params=_cparams(("parallel",), est),
    )(y_f, y_b, w_f, w_b, b)


# ----------------------------------------------------------------------------
# Parameter packing: pad each gate to Cp=round_up(cdim,128) lanes so gate
# slices / y stores are lane aligned; matmul weights are bf16, biases fp32.
# Zero padding keeps padded h/c lanes and padded batch rows exactly zero.
# ----------------------------------------------------------------------------
def _pad_gate_mat(w, rows_p, c, c_p, dtype=jnp.float32):
    w = jnp.asarray(w, jnp.float32)
    rows = w.shape[0]
    w4 = w.reshape(rows, 4, c)
    out = jnp.zeros((rows_p, 4, c_p), jnp.float32).at[:rows, :, :c].set(w4)
    return out.reshape(rows_p, 4 * c_p).astype(dtype)


def pack_layer_params(p, in_dim_p, c, c_p, h, h_p):
    wp = jnp.asarray(p['wp'], jnp.float32)
    wp_f = jnp.zeros((c_p, h_p), jnp.float32).at[:c, :h].set(wp[:c]).astype(jnp.bfloat16)
    wp_b = jnp.zeros((c_p, h_p), jnp.float32).at[:c, :h].set(wp[c:]).astype(jnp.bfloat16)
    bp = jnp.zeros((1, h_p), jnp.float32).at[:, :h].set(
        jnp.asarray(p['bp'], jnp.float32))
    return dict(
        wih_f=_pad_gate_mat(p['wih_f'], in_dim_p, c, c_p, jnp.bfloat16),
        wih_b=_pad_gate_mat(p['wih_b'], in_dim_p, c, c_p, jnp.bfloat16),
        b_f=_pad_gate_mat(p['b_f'], 1, c, c_p),
        b_b=_pad_gate_mat(p['b_b'], 1, c, c_p),
        whh_f=_pad_gate_mat(p['whh_f'], c_p, c, c_p, jnp.bfloat16),
        whh_b=_pad_gate_mat(p['whh_b'], c_p, c, c_p, jnp.bfloat16),
        wp_f=wp_f, wp_b=wp_b, bp=bp)


# ----------------------------------------------------------------------------
# RNNP forward (blstm) — Pallas path
# ----------------------------------------------------------------------------
def rnnp_forward_pallas(xs_pad, ilens, params, subsample, cdim, hdim):
    B, _, idim = xs_pad.shape
    Bp = _round_up(max(B, 8), 8)
    Cp = _round_up(cdim, 128)
    Hp = _round_up(hdim, 128)
    D0p = _round_up(idim, 128)
    # TODO(synk): lengths drive static shapes (trim/pad/subsample) host-side, so
    # a new max length triggers a retrace, mirroring pack/pad_packed semantics.
    ilens_np = np.asarray(ilens, dtype=np.int64)

    packed = [pack_layer_params(p, D0p if layer == 0 else Hp,
                                cdim, Cp, hdim, Hp)
              for layer, p in enumerate(params)]

    # time-major, batch/feature zero-padded activations
    T = int(ilens_np.max())
    x = jnp.transpose(jnp.asarray(xs_pad, jnp.float32)[:, :T], (1, 0, 2))
    x = jnp.pad(x, ((0, 0), (0, Bp - B), (0, D0p - idim)))

    elayer_states = []
    n_frames = T
    for layer, p in enumerate(packed):
        T = int(ilens_np.max())                      # == reference tmax
        TT = _choose_time_block(T, Bp, Cp)
        x = x[:T]                                    # pad_packed trims to max len
        Tp = _round_up(T, TT)
        if Tp != x.shape[0]:
            x = jnp.pad(x, ((0, Tp - x.shape[0]), (0, 0), (0, 0)))
        Dp = x.shape[-1]

        lens2d = jnp.zeros((Bp, 1), jnp.int32).at[:B, 0].set(
            jnp.asarray(ilens_np.astype(np.int32)))

        # hoisted x @ W_ih (+ bias) for both directions — one big tiled matmul
        gx_f, gx_b = gates_x(x.reshape(Tp * Bp, Dp),
                             p['wih_f'], p['wih_b'], p['b_f'], p['b_b'])
        gx_f = gx_f.reshape(Tp, Bp, 4 * Cp)
        gx_b = gx_b.reshape(Tp, Bp, 4 * Cp)

        y_f, y_b, h_n, c_n = bilstm(gx_f, gx_b, lens2d,
                                    p['whh_f'], p['whh_b'], time_block=TT)
        elayer_states.append((h_n[:, :B, :cdim], c_n[:, :B, :cdim]))

        sub = subsample[layer + 1]
        if sub > 1:
            n_frames = -(-T // sub)                  # frames of ys_pad[:, ::sub]
            ilens_np = np.array([(int(i) + 1) // sub for i in ilens_np])
        else:
            n_frames = T

        # subsample stride folded into proj's index_map (no y[::sub] HBM copy)
        x = proj_tanh(y_f, y_b, p['wp_f'], p['wp_b'], p['bp'],
                      n_frames=n_frames, sub=sub)

    out = jnp.transpose(x, (1, 0, 2))[:B, :n_frames, :hdim]
    return out, ilens_np, elayer_states


# ----------------------------------------------------------------------------
# Pure-JAX fp32 reference (lax.scan), mirroring the PyTorch module semantics
# ----------------------------------------------------------------------------
def _lstm_dir_ref(x_tbd, mask, wih, whh, b):
    _, B, _ = x_tbd.shape
    C = whh.shape[0]

    def step(carry, inp):
        h, c = carry
        x, m = inp
        gates = x @ wih + h @ whh + b
        i = jax.nn.sigmoid(gates[:, :C])
        f = jax.nn.sigmoid(gates[:, C:2 * C])
        g = jnp.tanh(gates[:, 2 * C:3 * C])
        o = jax.nn.sigmoid(gates[:, 3 * C:])
        c_new = f * c + i * g
        h_new = o * jnp.tanh(c_new)
        v = m > 0
        return ((jnp.where(v, h_new, h), jnp.where(v, c_new, c)),
                jnp.where(v, h_new, 0.0))

    (hT, cT), ys = jax.lax.scan(
        step,
        (jnp.zeros((B, C), jnp.float32), jnp.zeros((B, C), jnp.float32)),
        (x_tbd, mask))
    return ys, hT, cT


def rnnp_forward_ref(xs_pad, ilens, params, subsample, cdim, hdim):
    ilens_np = np.asarray(ilens, dtype=np.int64)
    x = jnp.asarray(xs_pad, jnp.float32)
    states = []
    for layer, p in enumerate(params):
        tmax = int(ilens_np.max())
        x = x[:, :tmax]
        x_tbd = jnp.transpose(x, (1, 0, 2))
        mask = (np.arange(tmax)[:, None] < ilens_np[None, :]).astype(np.float32)
        mask = jnp.asarray(mask)[:, :, None]
        y_f, h_f, c_f = _lstm_dir_ref(x_tbd, mask, p['wih_f'], p['whh_f'], p['b_f'])
        y_b_r, h_b, c_b = _lstm_dir_ref(x_tbd[::-1], mask[::-1],
                                        p['wih_b'], p['whh_b'], p['b_b'])
        y_b = y_b_r[::-1]
        states.append((jnp.stack([h_f, h_b]), jnp.stack([c_f, c_b])))
        ys_pad = jnp.transpose(jnp.concatenate([y_f, y_b], axis=-1), (1, 0, 2))
        sub = subsample[layer + 1]
        if sub > 1:
            ys_pad = ys_pad[:, ::sub]
            ilens_np = np.array([(int(i) + 1) // sub for i in ilens_np])
        Bc, Tc, K = ys_pad.shape
        proj = jnp.tanh(ys_pad.reshape(Bc * Tc, K) @ p['wp'] + p['bp'])
        x = proj.reshape(Bc, Tc, hdim)
    return x, ilens_np, states


# ----------------------------------------------------------------------------
# Deterministic parameter init (shapes follow RNNP.__init__, typ='blstm')
# ----------------------------------------------------------------------------
def init_params(key, idim, elayers, cdim, hdim):
    params = []
    for layer in range(elayers):
        inputdim = idim if layer == 0 else hdim
        k_rnn = 1.0 / np.sqrt(cdim)
        k_prj = 1.0 / np.sqrt(2 * cdim)
        keys = jax.random.split(jax.random.fold_in(key, layer), 10)

        def u(k, shape, s):
            return jax.random.uniform(k, shape, jnp.float32, -s, s)

        params.append(dict(
            # weights stored transposed relative to torch: (in, 4*cdim)
            wih_f=u(keys[0], (inputdim, 4 * cdim), k_rnn),
            whh_f=u(keys[1], (cdim, 4 * cdim), k_rnn),
            b_f=u(keys[2], (1, 4 * cdim), k_rnn) + u(keys[3], (1, 4 * cdim), k_rnn),
            wih_b=u(keys[4], (inputdim, 4 * cdim), k_rnn),
            whh_b=u(keys[5], (cdim, 4 * cdim), k_rnn),
            b_b=u(keys[6], (1, 4 * cdim), k_rnn) + u(keys[7], (1, 4 * cdim), k_rnn),
            wp=u(keys[8], (2 * cdim, hdim), k_prj),
            bp=u(keys[9], (1, hdim), k_prj),
        ))
    return params


if __name__ == "__main__":
    # TODO(synk): prev_state / reset_backward_rnn_state path not exercised
    # (prev_state=None default); LSTM dropout is a no-op for num_layers=1.
    B, Tmax, idim = 2, 8, 16
    elayers, cdim, hdim = 2, 32, 32
    subsample = [1, 2, 1]          # subsample[layer+1] used per layer

    key = jax.random.PRNGKey(0)
    kx, kp = jax.random.split(key)
    xs_pad = jax.random.normal(kx, (B, Tmax, idim), jnp.float32)
    ilens = [8, 6]                 # descending, as pack_padded_sequence requires
    params = init_params(kp, idim, elayers, cdim, hdim)

    out, olens, states = rnnp_forward_pallas(xs_pad, ilens, params, subsample,
                                             cdim, hdim)
    out = jax.block_until_ready(out)

    ref, rlens, _ = rnnp_forward_ref(xs_pad, ilens, params, subsample,
                                     cdim, hdim)
    assert out.shape == ref.shape, (out.shape, ref.shape)
    assert list(olens) == list(rlens)
    # bf16 MXU operands + bf16 gx/y streams vs. the fp32 reference
    np.testing.assert_allclose(np.asarray(out), np.asarray(ref),
                               rtol=4e-2, atol=4e-2)
    print("KERNEL_OK")
</pallas_src>

<mosaic_0001>
module attributes {stable_mosaic.version = 11 : i64} {
  func.func @_gates_x_kernel(%arg0: i32, %arg1: memref<64x128xf32, #tpu.memory_space<vmem>>, %arg2: memref<128x512xbf16, #tpu.memory_space<vmem>>, %arg3: memref<128x512xbf16, #tpu.memory_space<vmem>>, %arg4: memref<1x512xf32, #tpu.memory_space<vmem>>, %arg5: memref<1x512xf32, #tpu.memory_space<vmem>>, %arg6: memref<64x512xbf16, #tpu.memory_space<vmem>>, %arg7: memref<64x512xbf16, #tpu.memory_space<vmem>>) attributes {dimension_semantics = [#tpu.dimension_semantics<parallel>], iteration_bounds = array<i64: 1>, scalar_prefetch = 0 : i64, scratch_operands = 0 : i64, tpu.core_type = #tpu.core_type<tc>, window_params = [{transform_indices = @transform_0, window_bounds = array<i64: 64, 128>}, {pipeline_mode = #tpu.pipeline_mode<synchronous>, transform_indices = @transform_1, window_bounds = array<i64: 128, 512>}, {pipeline_mode = #tpu.pipeline_mode<synchronous>, transform_indices = @transform_2, window_bounds = array<i64: 128, 512>}, {pipeline_mode = #tpu.pipeline_mode<synchronous>, transform_indices = @transform_3, window_bounds = array<i64: 1, 512>}, {pipeline_mode = #tpu.pipeline_mode<synchronous>, transform_indices = @transform_4, window_bounds = array<i64: 1, 512>}, {transform_indices = @transform_5, window_bounds = array<i64: 64, 512>}, {transform_indices = @transform_6, window_bounds = array<i64: 64, 512>}]} {
    %c0 = arith.constant 0 : index
    %c0_0 = arith.constant 0 : index
    %0 = vector.load %arg1[%c0, %c0_0] : memref<64x128xf32, #tpu.memory_space<vmem>>, vector<64x128xf32>
    %1 = arith.truncf %0 : vector<64x128xf32> to vector<64x128xbf16>
    %c0_1 = arith.constant 0 : index
    %c0_2 = arith.constant 0 : index
    %2 = vector.load %arg2[%c0_1, %c0_2] : memref<128x512xbf16, #tpu.memory_space<vmem>>, vector<128x512xbf16>
    %cst = arith.constant dense<0.000000e+00> : vector<64x512xf32>
    %3 = tpu.matmul %1, %2, %cst {dimension_numbers = #tpu.dot_dimension_numbers<[1], [0], [0], [1], [0, 0, 1, 1], [], []>} : vector<64x128xbf16>, vector<128x512xbf16>, vector<64x512xf32> -> vector<64x512xf32>
    %c0_3 = arith.constant 0 : index
    %c0_4 = arith.constant 0 : index
    %4 = vector.load %arg4[%c0_3, %c0_4] : memref<1x512xf32, #tpu.memory_space<vmem>>, vector<1x512xf32>
    %5 = vector.broadcast %4 : vector<1x512xf32> to vector<64x512xf32>
    %6 = arith.addf %3, %5 : vector<64x512xf32>
    %c0_5 = arith.constant 0 : index
    %c0_6 = arith.constant 0 : index
    %7 = vector.load %arg3[%c0_5, %c0_6] : memref<128x512xbf16, #tpu.memory_space<vmem>>, vector<128x512xbf16>
    %cst_7 = arith.constant dense<0.000000e+00> : vector<64x512xf32>
    %8 = tpu.matmul %1, %7, %cst_7 {dimension_numbers = #tpu.dot_dimension_numbers<[1], [0], [0], [1], [0, 0, 1, 1], [], []>} : vector<64x128xbf16>, vector<128x512xbf16>, vector<64x512xf32> -> vector<64x512xf32>
    %c0_8 = arith.constant 0 : index
    %c0_9 = arith.constant 0 : index
    %9 = vector.load %arg5[%c0_8, %c0_9] : memref<1x512xf32, #tpu.memory_space<vmem>>, vector<1x512xf32>
    %10 = vector.broadcast %9 : vector<1x512xf32> to vector<64x512xf32>
    %11 = arith.addf %8, %10 : vector<64x512xf32>
    %12 = arith.truncf %6 : vector<64x512xf32> to vector<64x512xbf16>
    %c0_10 = arith.constant 0 : index
    %c0_11 = arith.constant 0 : index
    %13 = vector.load %arg6[%c0_10, %c0_11] : memref<64x512xbf16, #tpu.memory_space<vmem>>, vector<64x512xbf16>
    tpu.vector_store %arg6[%c0_10, %c0_11], %12 {strides = array<i32>} : memref<64x512xbf16, #tpu.memory_space<vmem>>, vector<64x512xbf16>,
    %14 = arith.truncf %11 : vector<64x512xf32> to vector<64x512xbf16>
    %c0_12 = arith.constant 0 : index
    %c0_13 = arith.constant 0 : index
    %15 = vector.load %arg7[%c0_12, %c0_13] : memref<64x512xbf16, #tpu.memory_space<vmem>>, vector<64x512xbf16>
    tpu.vector_store %arg7[%c0_12, %c0_13], %14 {strides = array<i32>} : memref<64x512xbf16, #tpu.memory_space<vmem>>, vector<64x512xbf16>,
    return
  }
  func.func @transform_0(%arg0: i32) -> (i32, i32) {
    %c0_i32 = arith.constant 0 : i32
    %c0_i32_0 = arith.constant 0 : i32
    return %arg0, %c0_i32 : i32, i32
  }
  func.func @transform_1(%arg0: i32) -> (i32, i32) {
    %c0_i32 = arith.constant 0 : i32
    %c0_i32_0 = arith.constant 0 : i32
    %c0_i32_1 = arith.constant 0 : i32
    return %c0_i32, %c0_i32_0 : i32, i32
  }
  func.func @transform_2(%arg0: i32) -> (i32, i32) {
    %c0_i32 = arith.constant 0 : i32
    %c0_i32_0 = arith.constant 0 : i32
    %c0_i32_1 = arith.constant 0 : i32
    return %c0_i32, %c0_i32_0 : i32, i32
  }
  func.func @transform_3(%arg0: i32) -> (i32, i32) {
    %c0_i32 = arith.constant 0 : i32
    %c0_i32_0 = arith.constant 0 : i32
    %c0_i32_1 = arith.constant 0 : i32
    return %c0_i32, %c0_i32_0 : i32, i32
  }
  func.func @transform_4(%arg0: i32) -> (i32, i32) {
    %c0_i32 = arith.constant 0 : i32
    %c0_i32_0 = arith.constant 0 : i32
    %c0_i32_1 = arith.constant 0 : i32
    return %c0_i32, %c0_i32_0 : i32, i32
  }
  func.func @transform_5(%arg0: i32) -> (i32, i32) {
    %c0_i32 = arith.constant 0 : i32
    %c0_i32_0 = arith.constant 0 : i32
    return %arg0, %c0_i32 : i32, i32
  }
  func.func @transform_6(%arg0: i32) -> (i32, i32) {
    %c0_i32 = arith.constant 0 : i32
    %c0_i32_0 = arith.constant 0 : i32
    return %arg0, %c0_i32 : i32, i32
  }
}

</mosaic_0001>

<bundles_post_ra>
// kernel: tpu_custom_call.1
= control target key start
LH: loop header
LB: loop body
LE: loop exit
PB: predicated region body
PF: predicated region fallthrough
CT: control target
= control target key end

     0   :  { %12 = vsyncpa [#allocation3], 0  ;;  %s1661_s0 = inlined_call_operand.hbm [shape: f32[64,128], index: 0, kind: input, shape index: {}]   ;;  %s1662_s1 = inlined_call_operand.hbm [shape: bf16[128,512], index: 1, kind: input, shape index: {}]   ;;  %s1663_s2 = inlined_call_operand.hbm [shape: bf16[128,512], index: 2, kind: input, shape index: {}]   ;;  %s1664_s3 = inlined_call_operand.vmem [shape: f32[1,512], index: 3, kind: input, shape index: {}]   ;;  %s1665_s4 = inlined_call_operand.vmem [shape: f32[1,512], index: 4, kind: input, shape index: {}]   ;;  %s1666_s5 = inlined_call_operand.hbm [shape: bf16[64,512], index: 5, kind: output, shape index: {0}]   ;;  %s1667_s6 = inlined_call_operand.hbm [shape: bf16[64,512], index: 6, kind: output, shape index: {1}]  }
   0x1   :  { %13 = vsyncpa [#allocation6], 0 }
   0x2   :  { %14 = vsyncpa [#allocation4], 0 }
   0x3   :  { %15 = vsyncpa [#allocation10], 0  ;;  %s1408_s21 = smov [#allocation5]   ;;  %s1290_s25 = scalar_lea.hbm %s1662_s1, 4096 }
   0x4   :  { %s33_s22 = sshll.u32 %s1408_s21, 4  ;;  %p1291_p0 = scmp.ne.s32.totalorder %s1662_s1, %s1290_s25  ;;  %s34_s22 = int_to_ptr.vmem [resolvable:$true] %s33_s22 }
   0x5   :  { %p1294_p1 = scmp.lt.u32.totalorder %s1290_s25, %s1662_s1 }
   0x7   :  { %p1296_p2 = pnand %p1294_p1, %p1291_p0 }
   0x9   :  { %1299 = shalt.err (!%p1296_p2)
}
   0xa   :  { %s1300_s30 = scalar_lea.vmem %s34_s22, 4096  ;;  %p1305_p4 = scmp.lt.s32.totalorder %s34_s22, %s34_s22 }
   0xb   :  { %p1301_p3 = scmp.ne.s32.totalorder %s34_s22, %s1300_s30  ;;  %p1306_p5 = scmp.lt.s32.totalorder %s1300_s30, %s1300_s30 }
   0xd   :  { %p1307_p6 = por %p1306_p5, %p1305_p4 }
   0xf   :  { %p1308_p7 = pnand %p1307_p6, %p1301_p3 }
  0x11   :  { %1311 = shalt.err (!%p1308_p7)
}
  0x12   :  { %s1409_s7 = smov 256   ;;  %s1410_s8 = smov 16  }
  0x13   :  { %39 = dma.hbm_to_vmem [thread:$0]  %s1662_s1, 4096, %s34_s22, [#allocation6], %s1409_s7, %s1409_s7, %s1410_s8  }
  0x14   :  { %s1411_s11 = smov [#allocation2]   ;;  %s1312_s15 = scalar_lea.hbm %s1661_s0, 1024 }
  0x15   :  { %s21_s12 = sshll.u32 %s1411_s11, 4  ;;  %p1313_p8 = scmp.ne.s32.totalorder %s1661_s0, %s1312_s15  ;;  %s22_s12 = int_to_ptr.vmem [resolvable:$true] %s21_s12 }
  0x16   :  { %p1316_p9 = scmp.lt.u32.totalorder %s1312_s15, %s1661_s0 }
  0x18   :  { %p1318_p10 = pnand %p1316_p9, %p1313_p8 }
  0x1a   :  { %1321 = shalt.err (!%p1318_p10)
}
  0x1b   :  { %s1322_s20 = scalar_lea.vmem %s22_s12, 1024  ;;  %p1327_p12 = scmp.lt.s32.totalorder %s22_s12, %s22_s12 }
  0x1c   :  { %p1323_p11 = scmp.ne.s32.totalorder %s22_s12, %s1322_s20  ;;  %p1328_p13 = scmp.lt.s32.totalorder %s1322_s20, %s1322_s20 }
  0x1e   :  { %p1329_p0 = por %p1328_p13, %p1327_p12 }
  0x20   :  { %p1330_p1 = pnand %p1329_p0, %p1323_p11 }
  0x22   :  { %1333 = shalt.err (!%p1330_p1)
}
  0x23   :  { %s1412_s1 = smov 128   ;;  %s1413_s21 = smov 8  }
  0x24   :  { %27 = dma.hbm_to_vmem [thread:$0]  %s1661_s0, 1024, %s22_s12, [#allocation3], %s1412_s1, %s1412_s1, %s1413_s21  }
  0x25   :  { %s1414_s24 = smov [#allocation7]   ;;  %s1334_s28 = scalar_lea.hbm %s1663_s2, 4096 }
  0x26   :  { %s45_s25 = sshll.u32 %s1414_s24, 4  ;;  %p1335_p2 = scmp.ne.s32.totalorder %s1663_s2, %s1334_s28  ;;  %s46_s25 = int_to_ptr.vmem [resolvable:$true] %s45_s25 }
  0x27   :  { %p1338_p3 = scmp.lt.u32.totalorder %s1334_s28, %s1663_s2 }
  0x29   :  { %p1340_p4 = pnand %p1338_p3, %p1335_p2 }
  0x2b   :  { %1343 = shalt.err (!%p1340_p4)
}
  0x2c   :  { %s1344_s11 = scalar_lea.vmem %s46_s25, 4096  ;;  %p1349_p6 = scmp.lt.s32.totalorder %s46_s25, %s46_s25 }
  0x2d   :  { %p1345_p5 = scmp.ne.s32.totalorder %s46_s25, %s1344_s11  ;;  %p1350_p7 = scmp.lt.s32.totalorder %s1344_s11, %s1344_s11 }
  0x2f   :  { %p1351_p8 = por %p1350_p7, %p1349_p6 }
  0x31   :  { %p1352_p9 = pnand %p1351_p8, %p1345_p5 }
  0x33   :  { %1355 = shalt.err (!%p1352_p9)
}
  0x34   :  { %51 = dma.hbm_to_vmem [thread:$0]  %s1663_s2, 4096, %s46_s25, [#allocation6], %s1409_s7, %s1409_s7, %s1410_s8  }
  0x35   :  { %1400 = dma.done.wait [#allocation3], 1024  }
  0x36   :  { %1401 = vsyncadd [#allocation3], 4294966272 }
  0x37   :  { %1402 = dma.done.wait [#allocation6], 8192  }
  0x38   :  { %1403 = vsyncadd [#allocation6], 4294959104  ;;  %v1415_v0 = vmov 0   ;;  %v1194_v1 = vld [vmem:[#allocation5 + $0x4] ss:$16 sps:$4 sm:$0xff]   ;;  %v67_v34 = vld [vmem:[#allocation2 + $0x8] sm:$0xff] }
  0x39   :  { %324 = vmatprep.mubr.bf16.mxu0 %v1415_v0  ;;  %397 = vmatprep.mubr.bf16.mxu1 %v1415_v0  ;;  %v1196_v2 = vld [vmem:[#allocation5 + $0xc] ss:$16 sps:$4 sm:$0xff]   ;;  %v1198_v3 = vld [vmem:[#allocation5] ss:$16 sps:$4 sm:$0xff]   ;;  %v1199_v4 = vld [vmem:[#allocation5 + $0x8] ss:$16 sps:$4 sm:$0xff]  }
  0x3a   :  { %292 = vmatprep.subr.bf16.mxu0 %v1194_v1  ;;  %365 = vmatprep.subr.bf16.mxu1 %v1196_v2  ;;  %v1200_v5 = vld [vmem:[#allocation5 + $0x24] ss:$16 sps:$4 sm:$0xff]   ;;  %v1202_v6 = vld [vmem:[#allocation5 + $0x2c] ss:$16 sps:$4 sm:$0xff]   ;;  %v1204_v7 = vld [vmem:[#allocation5 + $0x20] ss:$16 sps:$4 sm:$0xff]  }
  0x3b   :  { %293 = vmatpush1.bf16.msra.mxu0 %v1198_v3  ;;  %366 = vmatpush1.bf16.msra.mxu1 %v1199_v4  ;;  %v1205_v8 = vld [vmem:[#allocation5 + $0x28] ss:$16 sps:$4 sm:$0xff]   ;;  %v1206_v9 = vld [vmem:[#allocation5 + $0x44] ss:$16 sps:$4 sm:$0xff]   ;;  %v1208_v10 = vld [vmem:[#allocation5 + $0x4c] ss:$16 sps:$4 sm:$0xff]  }
  0x3c   :  { %294 = vmatprep.subr.bf16.mxu0 %v1200_v5  ;;  %367 = vmatprep.subr.bf16.mxu1 %v1202_v6  ;;  %v1210_v11 = vld [vmem:[#allocation5 + $0x40] ss:$16 sps:$4 sm:$0xff]   ;;  %v1211_v12 = vld [vmem:[#allocation5 + $0x48] ss:$16 sps:$4 sm:$0xff]   ;;  %v1212_v13 = vld [vmem:[#allocation5 + $0x64] ss:$16 sps:$4 sm:$0xff]  }
  0x3d   :  { %v1214_v14 = vld [vmem:[#allocation5 + $0x6c] ss:$16 sps:$4 sm:$0xff]   ;;  %v1216_v15 = vld [vmem:[#allocation5 + $0x60] ss:$16 sps:$4 sm:$0xff]   ;;  %v1217_v16 = vld [vmem:[#allocation5 + $0x68] ss:$16 sps:$4 sm:$0xff]  }
  0x3e   :  { %v1218_v17 = vld [vmem:[#allocation5 + $0x84] ss:$16 sps:$4 sm:$0xff]   ;;  %v1220_v18 = vld [vmem:[#allocation5 + $0x8c] ss:$16 sps:$4 sm:$0xff]   ;;  %v1222_v19 = vld [vmem:[#allocation5 + $0x80] ss:$16 sps:$4 sm:$0xff]  }
  0x3f   :  { %295 = vmatpush1.bf16.msra.mxu0 %v1204_v7  ;;  %368 = vmatpush1.bf16.msra.mxu1 %v1205_v8  ;;  %v1223_v20 = vld [vmem:[#allocation5 + $0x88] ss:$16 sps:$4 sm:$0xff]   ;;  %v1224_v21 = vld [vmem:[#allocation5 + $0xa4] ss:$16 sps:$4 sm:$0xff]   ;;  %v1226_v22 = vld [vmem:[#allocation5 + $0xac] ss:$16 sps:$4 sm:$0xff]  }
  0x40   :  { %296 = vmatprep.subr.bf16.mxu0 %v1206_v9  ;;  %369 = vmatprep.subr.bf16.mxu1 %v1208_v10  ;;  %v1228_v23 = vld [vmem:[#allocation5 + $0xa0] ss:$16 sps:$4 sm:$0xff]   ;;  %v1229_v24 = vld [vmem:[#allocation5 + $0xa8] ss:$16 sps:$4 sm:$0xff]   ;;  %v1230_v25 = vld [vmem:[#allocation5 + $0xc4] ss:$16 sps:$4 sm:$0xff]  }
  0x41   :  { %v1232_v26 = vld [vmem:[#allocation5 + $0xcc] ss:$16 sps:$4 sm:$0xff]   ;;  %v1234_v27 = vld [vmem:[#allocation5 + $0xc0] ss:$16 sps:$4 sm:$0xff]   ;;  %v1235_v28 = vld [vmem:[#allocation5 + $0xc8] ss:$16 sps:$4 sm:$0xff]  }
  0x42   :  { %v1236_v29 = vld [vmem:[#allocation5 + $0xe4] ss:$16 sps:$4 sm:$0xff]   ;;  %v1238_v30 = vld [vmem:[#allocation5 + $0xec] ss:$16 sps:$4 sm:$0xff]   ;;  %v1240_v31 = vld [vmem:[#allocation5 + $0xe0] ss:$16 sps:$4 sm:$0xff]  }
  0x43   :  { %297 = vmatpush1.bf16.msra.mxu0 %v1210_v11  ;;  %370 = vmatpush1.bf16.msra.mxu1 %v1211_v12  ;;  %v1241_v32 = vld [vmem:[#allocation5 + $0xe8] ss:$16 sps:$4 sm:$0xff]   ;;  %v66_v33 = vld [vmem:[#allocation2] sm:$0xff]  ;;  %v1247_v36 = vld [vmem:[#allocation7 + $0xc] ss:$16 sps:$4 sm:$0xff]   ;;  %s1416_s15 = smov [#allocation8]  }
  0x44   :  { %298 = vmatprep.subr.bf16.mxu0 %v1212_v13  ;;  %371 = vmatprep.subr.bf16.mxu1 %v1214_v14  ;;  %v1244_v35 = vld [vmem:[#allocation7 + $0x4] ss:$16 sps:$4 sm:$0xff]   ;;  %v1497_v37 = vpack.c.bf16 %v67_v34, %v66_v33  ;;  %v1242_v38 = vld [vmem:[#allocation7] ss:$16 sps:$4 sm:$0xff]   ;;  %v1245_v39 = vld [vmem:[#allocation7 + $0x8] ss:$16 sps:$4 sm:$0xff]   ;;  %v112_v14 = vlaneseq }
  0x45   :  { %v1250_v40 = vld [vmem:[#allocation7 + $0x24] ss:$16 sps:$4 sm:$0xff]   ;;  %v1253_v41 = vld [vmem:[#allocation7 + $0x2c] ss:$16 sps:$4 sm:$0xff]   ;;  %v1248_v42 = vld [vmem:[#allocation7 + $0x20] ss:$16 sps:$4 sm:$0xff]  }
  0x46   :  { %v1251_v43 = vld [vmem:[#allocation7 + $0x28] ss:$16 sps:$4 sm:$0xff]   ;;  %v68_v44 = vld [vmem:[#allocation2 + $0x10] sm:$0xff]  ;;  %v1259_v47 = vld [vmem:[#allocation7 + $0x4c] ss:$16 sps:$4 sm:$0xff]   ;;  %s1027_s16 = sshll.u32 %s1416_s15, 4  ;;  %s1028_s16 = int_to_ptr.vmem [resolvable:$true] %s1027_s16 }
  0x47   :  { %299 = vmatpush1.bf16.msra.mxu0 %v1216_v15  ;;  %372 = vmatpush1.bf16.msra.mxu1 %v1217_v16  ;;  %v69_v45 = vld [vmem:[#allocation2 + $0x18] sm:$0xff]  ;;  %v1256_v46 = vld [vmem:[#allocation7 + $0x44] ss:$16 sps:$4 sm:$0xff]   ;;  %v1254_v49 = vld [vmem:[#allocation7 + $0x40] ss:$16 sps:$4 sm:$0xff]   ;;  %v1523_v15 = vshrl.u32 %v112_v14, 7  ;;  %p1361_p11 = scmp.lt.s32.totalorder %s1028_s16, %s1028_s16 }
  0x48   :  { %300 = vmatprep.subr.bf16.mxu0 %v1218_v17  ;;  %373 = vmatprep.subr.bf16.mxu1 %v1220_v18  ;;  %v1503_v48 = vpack.c.bf16 %v69_v45, %v68_v44  ;;  %v1257_v50 = vld [vmem:[#allocation7 + $0x48] ss:$16 sps:$4 sm:$0xff]   ;;  %v1262_v51 = vld [vmem:[#allocation7 + $0x64] ss:$16 sps:$4 sm:$0xff]   ;;  %v1265_v52 = vld [vmem:[#allocation7 + $0x6c] ss:$16 sps:$4 sm:$0xff]  }
  0x49   :  { %v1260_v53 = vld [vmem:[#allocation7 + $0x60] ss:$16 sps:$4 sm:$0xff]   ;;  %v1263_v54 = vld [vmem:[#allocation7 + $0x68] ss:$16 sps:$4 sm:$0xff]   ;;  %v1268_v57 = vld [vmem:[#allocation7 + $0x84] ss:$16 sps:$4 sm:$0xff]  }
  0x4a   :  { %v70_v55 = vld [vmem:[#allocation2 + $0x20] sm:$0xff]  ;;  %v71_v56 = vld [vmem:[#allocation2 + $0x28] sm:$0xff]  ;;  %v72_v3 = vld [vmem:[#allocation2 + $0x30] sm:$0xff]  ;;  %v114_v16 = vsub.s32 0, %v1523_v15  ;;  %v122_v17 = vsub.s32 2, %v1523_v15 }
  0x4b   :  { %301 = vmatpush1.bf16.msra.mxu0 %v1222_v19  ;;  %374 = vmatpush1.bf16.msra.mxu1 %v1223_v20  ;;  %v1271_v58 = vld [vmem:[#allocation7 + $0x8c] ss:$16 sps:$4 sm:$0xff]   ;;  %v76_v59 = vpack.c.bf16 %v71_v56, %v70_v55  ;;  %v1266_v60 = vld [vmem:[#allocation7 + $0x80] ss:$16 sps:$4 sm:$0xff]   ;;  %v1269_v61 = vld [vmem:[#allocation7 + $0x88] ss:$16 sps:$4 sm:$0xff]  }
  0x4c   :  { %302 = vmatprep.subr.bf16.mxu0 %v1224_v21  ;;  %375 = vmatprep.subr.bf16.mxu1 %v1226_v22  ;;  %v1274_v62 = vld [vmem:[#allocation7 + $0xa4] ss:$16 sps:$4 sm:$0xff]   ;;  %v1277_v63 = vld [vmem:[#allocation7 + $0xac] ss:$16 sps:$4 sm:$0xff]   ;;  %v1272_v1 = vld [vmem:[#allocation7 + $0xa0] ss:$16 sps:$4 sm:$0xff]  }
  0x4d   :  { %v1275_v2 = vld [vmem:[#allocation7 + $0xa8] ss:$16 sps:$4 sm:$0xff]   ;;  %v1280_v5 = vld [vmem:[#allocation7 + $0xc4] ss:$16 sps:$4 sm:$0xff]   ;;  %v1283_v6 = vld [vmem:[#allocation7 + $0xcc] ss:$16 sps:$4 sm:$0xff]  }
  0x4e   :  { %v73_v4 = vld [vmem:[#allocation2 + $0x38] sm:$0xff]  ;;  %v1278_v8 = vld [vmem:[#allocation7 + $0xc0] ss:$16 sps:$4 sm:$0xff]   ;;  %v1286_v10 = vld [vmem:[#allocation7 + $0xe4] ss:$16 sps:$4 sm:$0xff]   ;;  %v118_v19 = vsub.s32 1, %v1523_v15 }
  0x4f   :  { %303 = vmatpush1.bf16.msra.mxu0 %v1228_v23  ;;  %376 = vmatpush1.bf16.msra.mxu1 %v1229_v24  ;;  %v77_v7 = vpack.c.bf16 %v73_v4, %v72_v3  ;;  %v1281_v9 = vld [vmem:[#allocation7 + $0xc8] ss:$16 sps:$4 sm:$0xff]   ;;  %v1289_v11 = vld [vmem:[#allocation7 + $0xec] ss:$16 sps:$4 sm:$0xff]   ;;  %v1284_v12 = vld [vmem:[#allocation7 + $0xe0] ss:$16 sps:$4 sm:$0xff]  }
  0x50   :  { %304 = vmatprep.subr.bf16.mxu0 %v1230_v25  ;;  %377 = vmatprep.subr.bf16.mxu1 %v1232_v26  ;;  %v1287_v13 = vld [vmem:[#allocation7 + $0xe8] ss:$16 sps:$4 sm:$0xff]   ;;  %v110_v18 = vld [vmem:[%s1664_s3] sm:$0xf]  ;;  %v126_v20 = vsub.s32 3, %v1523_v15 }
  0x51   :  { %v1538_v21 = vrot.slane %v110_v18, %v122_v17  ;;  %v1542_v22 = vrot.slane %v110_v18, %v118_v19 }
  0x52   :  { %v1546_v23 = vrot.slane %v110_v18, %v126_v20 }
  0x53   :  { %305 = vmatpush1.bf16.msra.mxu0 %v1234_v27  ;;  %378 = vmatpush1.bf16.msra.mxu1 %v1235_v28 }
  0x54   :  { %306 = vmatprep.subr.bf16.mxu0 %v1236_v29  ;;  %379 = vmatprep.subr.bf16.mxu1 %v1238_v30 }
  0x57   :  { %307 = vmatpush1.bf16.msra.mxu0 %v1240_v31  ;;  %380 = vmatpush1.bf16.msra.mxu1 %v1241_v32 }
  0x58   :  { %652 = vmatprep.subr.bf16.mxu0 %v1244_v35  ;;  %725 = vmatprep.subr.bf16.mxu1 %v1247_v36 }
  0x5a   :  { %325 = vmatmul.mubr.bf16.vlgmr.msra.gmra.mrb[0].mxu0 %v1497_v37  ;;  %398 = vmatmul.mubr.bf16.vlgmr.msra.gmra.mrb[0].mxu1 %v1497_v37 }
  0x5b   :  { %653 = vmatpush1.bf16.msra.mxu0 %v1242_v38  ;;  %726 = vmatpush1.bf16.msra.mxu1 %v1245_v39 }
  0x5c   :  { %654 = vmatprep.subr.bf16.mxu0 %v1250_v40  ;;  %727 = vmatprep.subr.bf16.mxu1 %v1253_v41 }
  0x5d   :  { %334 = vmatprep.mubr.bf16.mxu0 %v1415_v0  ;;  %407 = vmatprep.mubr.bf16.mxu1 %v1415_v0 }
  0x5f   :  { %655 = vmatpush1.bf16.msra.mxu0 %v1248_v42  ;;  %728 = vmatpush1.bf16.msra.mxu1 %v1251_v43 }
  0x60   :  { %656 = vmatprep.subr.bf16.mxu0 %v1256_v46  ;;  %729 = vmatprep.subr.bf16.mxu1 %v1259_v47 }
  0x62   :  { %335 = vmatmul.mubr.bf16.gmra.mrb[4].mxu0 %v1503_v48  ;;  %408 = vmatmul.mubr.bf16.gmra.mrb[4].mxu1 %v1503_v48 }
  0x63   :  { %657 = vmatpush1.bf16.msra.mxu0 %v1254_v49  ;;  %730 = vmatpush1.bf16.msra.mxu1 %v1257_v50 }
  0x64   :  { %658 = vmatprep.subr.bf16.mxu0 %v1262_v51  ;;  %731 = vmatprep.subr.bf16.mxu1 %v1265_v52 }
  0x65   :  { %344 = vmatprep.mubr.bf16.mxu0 %v1415_v0  ;;  %417 = vmatprep.mubr.bf16.mxu1 %v1415_v0 }
  0x67   :  { %659 = vmatpush1.bf16.msra.mxu0 %v1260_v53  ;;  %732 = vmatpush1.bf16.msra.mxu1 %v1263_v54 }
  0x68   :  { %660 = vmatprep.subr.bf16.mxu0 %v1268_v57  ;;  %733 = vmatprep.subr.bf16.mxu1 %v1271_v58 }
  0x6a   :  { %345 = vmatmul.mubr.bf16.gmra.mrb[8].mxu0 %v76_v59  ;;  %418 = vmatmul.mubr.bf16.gmra.mrb[8].mxu1 %v76_v59 }
  0x6b   :  { %661 = vmatpush1.bf16.msra.mxu0 %v1266_v60  ;;  %734 = vmatpush1.bf16.msra.mxu1 %v1269_v61 }
  0x6c   :  { %662 = vmatprep.subr.bf16.mxu0 %v1274_v62  ;;  %735 = vmatprep.subr.bf16.mxu1 %v1277_v63 }
  0x6d   :  { %354 = vmatprep.mubr.bf16.mxu0 %v1415_v0  ;;  %427 = vmatprep.mubr.bf16.mxu1 %v1415_v0 }
  0x6f   :  { %663 = vmatpush1.bf16.msra.mxu0 %v1272_v1  ;;  %736 = vmatpush1.bf16.msra.mxu1 %v1275_v2 }
  0x70   :  { %664 = vmatprep.subr.bf16.mxu0 %v1280_v5  ;;  %737 = vmatprep.subr.bf16.mxu1 %v1283_v6 }
  0x72   :  { %355 = vmatmul.mubr.bf16.gmra.mrb[12].mxu0 %v77_v7  ;;  %428 = vmatmul.mubr.bf16.gmra.mrb[12].mxu1 %v77_v7 }
  0x73   :  { %665 = vmatpush1.bf16.msra.mxu0 %v1278_v8  ;;  %738 = vmatpush1.bf16.msra.mxu1 %v1281_v9 }
  0x74   :  { %666 = vmatprep.subr.bf16.mxu0 %v1286_v10  ;;  %739 = vmatprep.subr.bf16.mxu1 %v1289_v11 }
  0x75   :  { %684 = vmatprep.mubr.bf16.mxu0 %v1415_v0  ;;  %757 = vmatprep.mubr.bf16.mxu1 %v1415_v0 }
  0x77   :  { %667 = vmatpush1.bf16.msra.mxu0 %v1284_v12  ;;  %740 = vmatpush1.bf16.msra.mxu1 %v1287_v13 }
  0x7a   :  { %685 = vmatmul.mubr.bf16.vlgmr.msra.gmra.mrb[16].mxu0 %v1497_v37  ;;  %758 = vmatmul.mubr.bf16.vlgmr.msra.gmra.mrb[16].mxu1 %v1497_v37 }
  0x7b   :  { %694 = vmatprep.mubr.bf16.mxu0 %v1415_v0  ;;  %767 = vmatprep.mubr.bf16.mxu1 %v1415_v0 }
  0x82   :  { %695 = vmatmul.mubr.bf16.gmra.mrb[20].mxu0 %v1503_v48  ;;  %768 = vmatmul.mubr.bf16.gmra.mrb[20].mxu1 %v1503_v48 }
  0x83   :  { %704 = vmatprep.mubr.bf16.mxu0 %v1415_v0  ;;  %777 = vmatprep.mubr.bf16.mxu1 %v1415_v0 }
  0x8a   :  { %705 = vmatmul.mubr.bf16.gmra.mrb[24].mxu0 %v76_v59  ;;  %778 = vmatmul.mubr.bf16.gmra.mrb[24].mxu1 %v76_v59 }
  0x8b   :  { %714 = vmatprep.mubr.bf16.mxu0 %v1415_v0  ;;  %787 = vmatprep.mubr.bf16.mxu1 %v1415_v0  ;;  %v1534_v0 = vrot.slane %v110_v18, %v114_v16 }
  0x92   :  { %715 = vmatmul.mubr.bf16.gmra.mrb[28].mxu0 %v77_v7  ;;  %788 = vmatmul.mubr.bf16.gmra.mrb[28].mxu1 %v77_v7 }
 0x12d   :  { %v326_v24 = vpop.f32.mrb[0].mxu0  ;;  %v399_v25 = vpop.f32.mrb[0].mxu1 }
 0x12e   :  { %v327_v26 = vadd.f32 %v326_v24, %v1534_v0  ;;  %v400_v27 = vadd.f32 %v399_v25, %v1538_v21  ;;  %v328_v28 = vpop.f32.mrb[1].mxu0  ;;  %v401_v29 = vpop.f32.mrb[1].mxu1 }
 0x12f   :  { %v329_v30 = vadd.f32 %v328_v28, %v1542_v22  ;;  %v402_v31 = vadd.f32 %v401_v29, %v1546_v23  ;;  %v330_v32 = vpop.f32.mrb[2].mxu0  ;;  %v403_v33 = vpop.f32.mrb[2].mxu1 }
 0x130   :  { %v331_v34 = vadd.f32 %v330_v32, %v1534_v0  ;;  %v404_v35 = vadd.f32 %v403_v33, %v1538_v21  ;;  %v332_v36 = vpop.f32.mrb[3].mxu0  ;;  %v405_v37 = vpop.f32.mrb[3].mxu1 }
 0x131   :  { %v1152_v38 = vpack.c.bf16 %v329_v30, %v327_v26  ;;  %v1153_v39 = vpack.c.bf16 %v402_v31, %v400_v27  ;;  %v333_v40 = vadd.f32 %v332_v36, %v1542_v22  ;;  %v406_v41 = vadd.f32 %v405_v37, %v1546_v23 }
 0x133   :  { %894 = vst [vmem:[#allocation8] sm:$0xff] %v1152_v38  ;;  %895 = vst [vmem:[#allocation8 + $0x8] sm:$0xff] %v1153_v39  ;;  %v1154_v42 = vpack.c.bf16 %v333_v40, %v331_v34  ;;  %v1155_v43 = vpack.c.bf16 %v406_v41, %v404_v35  ;;  %v470_v39 = vld [vmem:[%s1665_s4] sm:$0xf]  ;;  %s1356_s4 = scalar_lea.vmem %s1028_s16, 2048 }
 0x134   :  { %p1357_p10 = scmp.ne.s32.totalorder %s1028_s16, %s1356_s4  ;;  %p1362_p12 = scmp.lt.s32.totalorder %s1356_s4, %s1356_s4 }
 0x135   :  { %896 = vst [vmem:[#allocation8 + $0x10] sm:$0xff] %v1154_v42  ;;  %897 = vst [vmem:[#allocation8 + $0x18] sm:$0xff] %v1155_v43  ;;  %v336_v44 = vpop.f32.mrb[4].mxu0  ;;  %v409_v45 = vpop.f32.mrb[4].mxu1 }
 0x136   :  { %v337_v46 = vadd.f32 %v336_v44, %v1534_v0  ;;  %v410_v47 = vadd.f32 %v409_v45, %v1538_v21  ;;  %v338_v48 = vpop.f32.mrb[5].mxu0  ;;  %v411_v49 = vpop.f32.mrb[5].mxu1  ;;  %p1363_p13 = por %p1362_p12, %p1361_p11 }
 0x137   :  { %v339_v50 = vadd.f32 %v338_v48, %v1542_v22  ;;  %v412_v51 = vadd.f32 %v411_v49, %v1546_v23  ;;  %v340_v52 = vpop.f32.mrb[6].mxu0  ;;  %v413_v53 = vpop.f32.mrb[6].mxu1  ;;  %v1585_v48 = vrot.slane %v470_v39, %v114_v16  ;;  %v1589_v49 = vrot.slane %v470_v39, %v122_v17 }
 0x138   :  { %v341_v54 = vadd.f32 %v340_v52, %v1534_v0  ;;  %v414_v55 = vadd.f32 %v413_v53, %v1538_v21  ;;  %v342_v56 = vpop.f32.mrb[7].mxu0  ;;  %v415_v57 = vpop.f32.mrb[7].mxu1  ;;  %p1364_p0 = pnand %p1363_p13, %p1357_p10 }
 0x139   :  { %v1156_v58 = vpack.c.bf16 %v339_v50, %v337_v46  ;;  %v1157_v59 = vpack.c.bf16 %v412_v51, %v410_v47  ;;  %v343_v60 = vadd.f32 %v342_v56, %v1542_v22  ;;  %v416_v61 = vadd.f32 %v415_v57, %v1546_v23 }
 0x13a   :  { %v1593_v50 = vrot.slane %v470_v39, %v118_v19 }
 0x13b   :  { %898 = vst [vmem:[#allocation8 + $0x20] sm:$0xff] %v1156_v58  ;;  %899 = vst [vmem:[#allocation8 + $0x28] sm:$0xff] %v1157_v59  ;;  %v1158_v62 = vpack.c.bf16 %v343_v60, %v341_v54  ;;  %v1159_v63 = vpack.c.bf16 %v416_v61, %v414_v55 }
 0x13d   :  { %900 = vst [vmem:[#allocation8 + $0x30] sm:$0xff] %v1158_v62  ;;  %901 = vst [vmem:[#allocation8 + $0x38] sm:$0xff] %v1159_v63  ;;  %v346_v1 = vpop.f32.mrb[8].mxu0  ;;  %v419_v2 = vpop.f32.mrb[8].mxu1 }
 0x13e   :  { %v347_v3 = vadd.f32 %v346_v1, %v1534_v0  ;;  %v420_v4 = vadd.f32 %v419_v2, %v1538_v21  ;;  %v348_v5 = vpop.f32.mrb[9].mxu0  ;;  %v421_v6 = vpop.f32.mrb[9].mxu1 }
 0x13f   :  { %v349_v7 = vadd.f32 %v348_v5, %v1542_v22  ;;  %v422_v8 = vadd.f32 %v421_v6, %v1546_v23  ;;  %v350_v9 = vpop.f32.mrb[10].mxu0  ;;  %v423_v10 = vpop.f32.mrb[10].mxu1 }
 0x140   :  { %v351_v11 = vadd.f32 %v350_v9, %v1534_v0  ;;  %v424_v12 = vadd.f32 %v423_v10, %v1538_v21  ;;  %v352_v13 = vpop.f32.mrb[11].mxu0  ;;  %v425_v14 = vpop.f32.mrb[11].mxu1 }
 0x141   :  { %v1160_v18 = vpack.c.bf16 %v349_v7, %v347_v3  ;;  %v1161_v24 = vpack.c.bf16 %v422_v8, %v420_v4  ;;  %v353_v25 = vadd.f32 %v352_v13, %v1542_v22  ;;  %v426_v26 = vadd.f32 %v425_v14, %v1546_v23 }
 0x143   :  { %902 = vst [vmem:[#allocation8 + $0x40] sm:$0xff] %v1160_v18  ;;  %903 = vst [vmem:[#allocation8 + $0x48] sm:$0xff] %v1161_v24  ;;  %v1162_v27 = vpack.c.bf16 %v353_v25, %v351_v11  ;;  %v1163_v28 = vpack.c.bf16 %v426_v26, %v424_v12 }
 0x145   :  { %904 = vst [vmem:[#allocation8 + $0x50] sm:$0xff] %v1162_v27  ;;  %905 = vst [vmem:[#allocation8 + $0x58] sm:$0xff] %v1163_v28  ;;  %v356_v29 = vpop.f32.mrb[12].mxu0  ;;  %v429_v30 = vpop.f32.mrb[12].mxu1 }
 0x146   :  { %v357_v31 = vadd.f32 %v356_v29, %v1534_v0  ;;  %v430_v32 = vadd.f32 %v429_v30, %v1538_v21  ;;  %v358_v33 = vpop.f32.mrb[13].mxu0  ;;  %v431_v34 = vpop.f32.mrb[13].mxu1 }
 0x147   :  { %v359_v35 = vadd.f32 %v358_v33, %v1542_v22  ;;  %v432_v36 = vadd.f32 %v431_v34, %v1546_v23  ;;  %v360_v37 = vpop.f32.mrb[14].mxu0  ;;  %v433_v38 = vpop.f32.mrb[14].mxu1 }
 0x148   :  { %v361_v40 = vadd.f32 %v360_v37, %v1534_v0  ;;  %v434_v41 = vadd.f32 %v433_v38, %v1538_v21  ;;  %v362_v42 = vpop.f32.mrb[15].mxu0  ;;  %v435_v43 = vpop.f32.mrb[15].mxu1 }
 0x149   :  { %v1164_v44 = vpack.c.bf16 %v359_v35, %v357_v31  ;;  %v1165_v45 = vpack.c.bf16 %v432_v36, %v430_v32  ;;  %v363_v46 = vadd.f32 %v362_v42, %v1542_v22  ;;  %v436_v47 = vadd.f32 %v435_v43, %v1546_v23 }
 0x14a   :  { %v1597_v22 = vrot.slane %v470_v39, %v126_v20 }
 0x14b   :  { %906 = vst [vmem:[#allocation8 + $0x60] sm:$0xff] %v1164_v44  ;;  %907 = vst [vmem:[#allocation8 + $0x68] sm:$0xff] %v1165_v45  ;;  %v1166_v0 = vpack.c.bf16 %v363_v46, %v361_v40  ;;  %v1167_v21 = vpack.c.bf16 %v436_v47, %v434_v41 }
 0x14d   :  { %908 = vst [vmem:[#allocation8 + $0x70] sm:$0xff] %v1166_v0  ;;  %909 = vst [vmem:[#allocation8 + $0x78] sm:$0xff] %v1167_v21  ;;  %v686_v16 = vpop.f32.mrb[16].mxu0  ;;  %v759_v23 = vpop.f32.mrb[16].mxu1 }
 0x14e   :  { %v687_v17 = vadd.f32 %v686_v16, %v1585_v48  ;;  %v760_v51 = vadd.f32 %v759_v23, %v1589_v49  ;;  %v688_v52 = vpop.f32.mrb[17].mxu0  ;;  %v761_v53 = vpop.f32.mrb[17].mxu1 }
 0x14f   :  { %1367 = shalt.err (!%p1364_p0)
}
 0x150   :  { %s1368_s19 = scalar_lea.hbm %s1666_s5, 2048 }
 0x151   :  { %p1369_p1 = scmp.ne.s32.totalorder %s1666_s5, %s1368_s19  ;;  %p1372_p2 = scmp.lt.u32.totalorder %s1368_s19, %s1666_s5 }
 0x153   :  { %p1374_p3 = pnand %p1372_p2, %p1369_p1 }
 0x155   :  { %1377 = shalt.err (!%p1374_p3)
}
 0x156   :  { %1033 = dma.vmem_to_hbm [thread:$0]  %s1028_s16, 2048, %s1666_s5, [#allocation4], %s1409_s7, %s1409_s7, %s1410_s8   ;;  %v689_v15 = vadd.f32 %v688_v52, %v1593_v50  ;;  %v762_v19 = vadd.f32 %v761_v53, %v1597_v22  ;;  %v690_v20 = vpop.f32.mrb[18].mxu0  ;;  %v763_v54 = vpop.f32.mrb[18].mxu1 }
 0x157   :  { %v691_v55 = vadd.f32 %v690_v20, %v1585_v48  ;;  %v764_v56 = vadd.f32 %v763_v54, %v1589_v49  ;;  %v692_v57 = vpop.f32.mrb[19].mxu0  ;;  %v765_v58 = vpop.f32.mrb[19].mxu1  ;;  %s1417_s5 = smov [#allocation9]  }
 0x158   :  { %v1168_v59 = vpack.c.bf16 %v689_v15, %v687_v17  ;;  %v1169_v60 = vpack.c.bf16 %v762_v19, %v760_v51  ;;  %v693_v61 = vadd.f32 %v692_v57, %v1593_v50  ;;  %v766_v62 = vadd.f32 %v765_v58, %v1597_v22  ;;  %v696_v2 = vpop.f32.mrb[20].mxu0  ;;  %v769_v3 = vpop.f32.mrb[20].mxu1  ;;  %s1039_s25 = sshll.u32 %s1417_s5, 4  ;;  %s1040_s25 = int_to_ptr.vmem [resolvable:$true] %s1039_s25 }
 0x159   :  { %v697_v4 = vadd.f32 %v696_v2, %v1585_v48  ;;  %v770_v5 = vadd.f32 %v769_v3, %v1589_v49  ;;  %v698_v6 = vpop.f32.mrb[21].mxu0  ;;  %v771_v7 = vpop.f32.mrb[21].mxu1  ;;  %s1378_s26 = scalar_lea.vmem %s1040_s25, 2048  ;;  %p1383_p5 = scmp.lt.s32.totalorder %s1040_s25, %s1040_s25 }
 0x15a   :  { %1006 = vst [vmem:[#allocation9] sm:$0xff] %v1168_v59  ;;  %1007 = vst [vmem:[#allocation9 + $0x8] sm:$0xff] %v1169_v60  ;;  %v1170_v63 = vpack.c.bf16 %v693_v61, %v691_v55  ;;  %v1171_v1 = vpack.c.bf16 %v766_v62, %v764_v56  ;;  %v699_v8 = vadd.f32 %v698_v6, %v1593_v50  ;;  %v700_v10 = vpop.f32.mrb[22].mxu0  ;;  %v773_v11 = vpop.f32.mrb[22].mxu1  ;;  %p1379_p4 = scmp.ne.s32.totalorder %s1040_s25, %s1378_s26  ;;  %p1384_p6 = scmp.lt.s32.totalorder %s1378_s26, %s1378_s26 }
 0x15b   :  { %v772_v9 = vadd.f32 %v771_v7, %v1597_v22  ;;  %v701_v12 = vadd.f32 %v700_v10, %v1585_v48  ;;  %v774_v13 = vadd.f32 %v773_v11, %v1589_v49  ;;  %v702_v14 = vpop.f32.mrb[23].mxu0  ;;  %v775_v18 = vpop.f32.mrb[23].mxu1 }
 0x15c   :  { %1008 = vst [vmem:[#allocation9 + $0x10] sm:$0xff] %v1170_v63  ;;  %1009 = vst [vmem:[#allocation9 + $0x18] sm:$0xff] %v1171_v1  ;;  %v1172_v24 = vpack.c.bf16 %v699_v8, %v697_v4  ;;  %v703_v26 = vadd.f32 %v702_v14, %v1593_v50  ;;  %v776_v27 = vadd.f32 %v775_v18, %v1597_v22  ;;  %p1385_p7 = por %p1384_p6, %p1383_p5 }
 0x15d   :  { %v1173_v25 = vpack.c.bf16 %v772_v9, %v770_v5  ;;  %v706_v30 = vpop.f32.mrb[24].mxu0  ;;  %v779_v31 = vpop.f32.mrb[24].mxu1 }
 0x15e   :  { %1010 = vst [vmem:[#allocation9 + $0x20] sm:$0xff] %v1172_v24  ;;  %v1174_v28 = vpack.c.bf16 %v703_v26, %v701_v12  ;;  %v1175_v29 = vpack.c.bf16 %v776_v27, %v774_v13  ;;  %v707_v32 = vadd.f32 %v706_v30, %v1585_v48  ;;  %v780_v33 = vadd.f32 %v779_v31, %v1589_v49  ;;  %v708_v34 = vpop.f32.mrb[25].mxu0  ;;  %v781_v35 = vpop.f32.mrb[25].mxu1  ;;  %p1386_p8 = pnand %p1385_p7, %p1379_p4 }
 0x15f   :  { %1011 = vst [vmem:[#allocation9 + $0x28] sm:$0xff] %v1173_v25  ;;  %v709_v36 = vadd.f32 %v708_v34, %v1593_v50  ;;  %v782_v37 = vadd.f32 %v781_v35, %v1597_v22  ;;  %v710_v38 = vpop.f32.mrb[26].mxu0  ;;  %v783_v39 = vpop.f32.mrb[26].mxu1 }
 0x160   :  { %1012 = vst [vmem:[#allocation9 + $0x30] sm:$0xff] %v1174_v28  ;;  %1013 = vst [vmem:[#allocation9 + $0x38] sm:$0xff] %v1175_v29  ;;  %v711_v40 = vadd.f32 %v710_v38, %v1585_v48  ;;  %v784_v41 = vadd.f32 %v783_v39, %v1589_v49  ;;  %v712_v42 = vpop.f32.mrb[27].mxu0  ;;  %v785_v43 = vpop.f32.mrb[27].mxu1 }
 0x161   :  { %v1176_v44 = vpack.c.bf16 %v709_v36, %v707_v32  ;;  %v1177_v45 = vpack.c.bf16 %v782_v37, %v780_v33  ;;  %v713_v46 = vadd.f32 %v712_v42, %v1593_v50  ;;  %v786_v47 = vadd.f32 %v785_v43, %v1597_v22 }
 0x163   :  { %1014 = vst [vmem:[#allocation9 + $0x40] sm:$0xff] %v1176_v44  ;;  %1015 = vst [vmem:[#allocation9 + $0x48] sm:$0xff] %v1177_v45  ;;  %v1178_v0 = vpack.c.bf16 %v713_v46, %v711_v40  ;;  %v1179_v21 = vpack.c.bf16 %v786_v47, %v784_v41 }
 0x165   :  { %1016 = vst [vmem:[#allocation9 + $0x50] sm:$0xff] %v1178_v0  ;;  %1017 = vst [vmem:[#allocation9 + $0x58] sm:$0xff] %v1179_v21  ;;  %v716_v16 = vpop.f32.mrb[28].mxu0  ;;  %v789_v23 = vpop.f32.mrb[28].mxu1 }
 0x166   :  { %v717_v17 = vadd.f32 %v716_v16, %v1585_v48  ;;  %v790_v51 = vadd.f32 %v789_v23, %v1589_v49  ;;  %v718_v52 = vpop.f32.mrb[29].mxu0  ;;  %v791_v53 = vpop.f32.mrb[29].mxu1 }
 0x167   :  { %v719_v15 = vadd.f32 %v718_v52, %v1593_v50  ;;  %v792_v19 = vadd.f32 %v791_v53, %v1597_v22  ;;  %v720_v20 = vpop.f32.mrb[30].mxu0  ;;  %v793_v54 = vpop.f32.mrb[30].mxu1 }
 0x168   :  { %v721_v55 = vadd.f32 %v720_v20, %v1585_v48  ;;  %v794_v56 = vadd.f32 %v793_v54, %v1589_v49  ;;  %v722_v57 = vpop.f32.mrb[31].mxu0  ;;  %v795_v58 = vpop.f32.mrb[31].mxu1 }
 0x169   :  { %v1180_v59 = vpack.c.bf16 %v719_v15, %v717_v17  ;;  %v1181_v60 = vpack.c.bf16 %v792_v19, %v790_v51  ;;  %v723_v61 = vadd.f32 %v722_v57, %v1593_v50  ;;  %v796_v62 = vadd.f32 %v795_v58, %v1597_v22 }
 0x16b   :  { %1018 = vst [vmem:[#allocation9 + $0x60] sm:$0xff] %v1180_v59  ;;  %1019 = vst [vmem:[#allocation9 + $0x68] sm:$0xff] %v1181_v60  ;;  %v1182_v63 = vpack.c.bf16 %v723_v61, %v721_v55  ;;  %v1183_v1 = vpack.c.bf16 %v796_v62, %v794_v56 }
 0x16d   :  { %1020 = vst [vmem:[#allocation9 + $0x70] sm:$0xff] %v1182_v63  ;;  %1021 = vst [vmem:[#allocation9 + $0x78] sm:$0xff] %v1183_v1 }
 0x16e   :  { %1389 = shalt.err (!%p1386_p8)
}
 0x16f   :  { %s1390_s29 = scalar_lea.hbm %s1667_s6, 2048 }
 0x170   :  { %p1391_p9 = scmp.ne.s32.totalorder %s1667_s6, %s1390_s29  ;;  %p1394_p10 = scmp.lt.u32.totalorder %s1390_s29, %s1667_s6 }
 0x172   :  { %p1396_p11 = pnand %p1394_p10, %p1391_p9 }
 0x174   :  { %1399 = shalt.err (!%p1396_p11)
}
 0x175   :  { %1045 = dma.vmem_to_hbm [thread:$0]  %s1040_s25, 2048, %s1667_s6, [#allocation10], %s1409_s7, %s1409_s7, %s1410_s8  }
 0x176   :  { %1404 = dma.done.wait [#allocation4], 2048  }
 0x177   :  { %1405 = vsyncadd [#allocation4], 4294965248 }
 0x178   :  { %1406 = dma.done.wait [#allocation10], 2048  }
 0x179   :  { %1407 = vsyncadd [#allocation10], 4294965248 }
 0x17a   :  { %1052 = vsyncpa [#allocation3], 1 }
 0x17b   :  { %1053 = vsyncpa [#allocation6], 1 }
 0x17c   :  { %1054 = vsyncpa [#allocation4], 1 }
 0x17d   :  { %1055 = vsyncpa [#allocation10], 1 }

</bundles_post_ra>
